<compile_context>
chip_gen: v7x
topology: tpu7x:2x2x1
jax: 0.10.0
libtpu: 0.0.40
codegen_flags: <defaults>
</compile_context>

<pallas_src>
import functools

import jax
import jax.numpy as jnp
from jax.experimental import pallas as pl
from jax.experimental.pallas import tpu as pltpu

LANE = 128


def _round_up(x, m):
    return (x + m - 1) // m * m


def _tpu_vmem_bytes():
    try:
        return int(pltpu.get_tpu_info().vmem_capacity_bytes)
    except Exception:
        return 64 << 20  # conservative (v7x-sized) fallback


def _compiler_params():
    cap = _tpu_vmem_bytes()
    # Leave headroom for double-buffered pipeline buffers + scratch:
    # v7x (64 MiB)  -> 48 MiB, v5e/v6e (128 MiB) -> 96 MiB.
    limit = min(cap * 3 // 4, 100 << 20)
    return pltpu.CompilerParams(
        dimension_semantics=("parallel",),
        vmem_limit_bytes=limit,
    )


def _row_tile(n_rows):
    cap = _tpu_vmem_bytes()
    target = 512 if cap >= (96 << 20) else 256  # bigger panels on v5e/v6e than v7x
    return n_rows if n_rows <= target else target


# ----------------------------- kernels --------------------------------------


def _xw_kernel(x_ref, w_ref, o_ref):
    # Feature transform: (tm, F) @ (F, Cp) with bf16 MXU operands, f32 accumulation.
    x = x_ref[...].astype(jnp.bfloat16)
    w = w_ref[...].astype(jnp.bfloat16)
    o_ref[...] = jnp.dot(x, w, preferred_element_type=jnp.float32)


def _aggregate_kernel(a_ref, xw_ref, b_ref, o_ref, *, apply_relu):
    # Aggregation: (tm, N) @ (N, Cp) + bias [+ relu]; bias/relu stay in f32 (VPU).
    a = a_ref[...].astype(jnp.bfloat16)
    xw = xw_ref[...].astype(jnp.bfloat16)
    out = jnp.dot(a, xw, preferred_element_type=jnp.float32) + b_ref[...]
    if apply_relu:
        out = jnp.maximum(out, 0.0)
    o_ref[...] = out


# ----------------------------- layer wrapper ---------------------------------


def graph_conv(a_bf16, x, w, b, *, apply_relu):
    """One GraphConv layer (norm='both'):  A_hat @ (X @ W) + b  [+ relu]."""
    n = a_bf16.shape[0]
    f = x.shape[1]
    out_dim = w.shape[1]
    cp = _round_up(out_dim, LANE)  # lane-dense weight columns / output

    w_p = jnp.zeros((f, cp), jnp.float32).at[:, :out_dim].set(w.astype(jnp.float32))
    b_p = jnp.zeros((1, cp), jnp.float32).at[:, :out_dim].set(b.astype(jnp.float32))

    tm = _row_tile(n)
    grid = (pl.cdiv(n, tm),)
    params = _compiler_params()

    # 1) cheap feature transform first (re-association shrinks the N^2 matmul).
    xw = pl.pallas_call(
        _xw_kernel,
        out_shape=jax.ShapeDtypeStruct((n, cp), jnp.float32),
        grid=grid,
        in_specs=[
            pl.BlockSpec((tm, f), lambda i: (i, 0)),
            pl.BlockSpec((f, cp), lambda i: (0, 0)),
        ],
        out_specs=pl.BlockSpec((tm, cp), lambda i: (i, 0)),
        compiler_params=params,
    )(x, w_p)

    # 2) row-tiled aggregation over A_hat; XW and bias stay fully resident.
    out_p = pl.pallas_call(
        functools.partial(_aggregate_kernel, apply_relu=apply_relu),
        out_shape=jax.ShapeDtypeStruct((n, cp), jnp.float32),
        grid=grid,
        in_specs=[
            pl.BlockSpec((tm, n), lambda i: (i, 0)),
            pl.BlockSpec((n, cp), lambda i: (0, 0)),
            pl.BlockSpec((1, cp), lambda i: (0, 0)),
        ],
        out_specs=pl.BlockSpec((tm, cp), lambda i: (i, 0)),
        compiler_params=params,
    )(a_bf16, xw, b_p)

    return out_p[:, :out_dim]


def gcn_forward(a_hat, x, w1, b1, w2, b2):
    a_bf16 = a_hat.astype(jnp.bfloat16)  # halve DMA/VMEM for the (N, N) operand
    h1 = graph_conv(a_bf16, x, w1, b1, apply_relu=True)       # (N, H)
    out = graph_conv(a_bf16, h1, w2, b2, apply_relu=False)    # (N, C)
    return out


def gcn_reference(a_hat, x, w1, b1, w2, b2):
    h = jnp.maximum(a_hat @ x @ w1 + b1, 0.0)
    return a_hat @ h @ w2 + b2


def build_normalized_adjacency(key, n):
    # deterministic random undirected graph + self-loops, symmetric normalization
    raw = jax.random.uniform(key, (n, n))
    adj = (raw + raw.T) > 1.2
    adj = adj.astype(jnp.float32) + jnp.eye(n, dtype=jnp.float32)
    adj = jnp.minimum(adj, 1.0)
    deg = adj.sum(axis=1)
    d_inv_sqrt = 1.0 / jnp.sqrt(deg)
    return adj * d_inv_sqrt[:, None] * d_inv_sqrt[None, :]


if __name__ == "__main__":
    # small shapes: N nodes, in_feats=32, hidden=32, num_classes=8
    N, IN_FEATS, HIDDEN, NUM_CLASSES = 32, 32, 32, 8

    key = jax.random.PRNGKey(0)
    k_adj, k_x, k_w1, k_b1, k_w2, k_b2 = jax.random.split(key, 6)

    a_hat = build_normalized_adjacency(k_adj, N)
    x = jax.random.normal(k_x, (N, IN_FEATS), dtype=jnp.float32)

    w1 = jax.random.normal(k_w1, (IN_FEATS, HIDDEN), dtype=jnp.float32) * (
        1.0 / jnp.sqrt(IN_FEATS)
    )
    b1 = jax.random.normal(k_b1, (1, HIDDEN), dtype=jnp.float32) * 0.01
    w2 = jax.random.normal(k_w2, (HIDDEN, NUM_CLASSES), dtype=jnp.float32) * (
        1.0 / jnp.sqrt(HIDDEN)
    )
    b2 = jax.random.normal(k_b2, (1, NUM_CLASSES), dtype=jnp.float32) * 0.01

    out = gcn_forward(a_hat, x, w1, b1, w2, b2)
    out = jax.block_until_ready(out)

    ref = gcn_reference(a_hat, x, w1, b1, w2, b2)
    assert out.shape == (N, NUM_CLASSES)
    # bf16 MXU operands (f32 accumulation) -> slightly loosened tolerance.
    assert jnp.allclose(out, ref, atol=5e-2, rtol=5e-2)

    print("KERNEL_OK")
</pallas_src>

<mosaic_0001>
module attributes {stable_mosaic.version = 11 : i64} {
  func.func @_xw_kernel(%arg0: i32, %arg1: memref<32x32xf32, #tpu.memory_space<vmem>>, %arg2: memref<32x128xf32, #tpu.memory_space<vmem>>, %arg3: memref<32x128xf32, #tpu.memory_space<vmem>>) attributes {dimension_semantics = [#tpu.dimension_semantics<parallel>], iteration_bounds = array<i64: 1>, scalar_prefetch = 0 : i64, scratch_operands = 0 : i64, tpu.core_type = #tpu.core_type<tc>, window_params = [{transform_indices = @transform_0, window_bounds = array<i64: 32, 32>}, {pipeline_mode = #tpu.pipeline_mode<synchronous>, transform_indices = @transform_1, window_bounds = array<i64: 32, 128>}, {transform_indices = @transform_2, window_bounds = array<i64: 32, 128>}]} {
    %c0 = arith.constant 0 : index
    %c0_0 = arith.constant 0 : index
    %0 = vector.load %arg1[%c0, %c0_0] : memref<32x32xf32, #tpu.memory_space<vmem>>, vector<32x32xf32>
    %1 = arith.truncf %0 : vector<32x32xf32> to vector<32x32xbf16>
    %c0_1 = arith.constant 0 : index
    %c0_2 = arith.constant 0 : index
    %2 = vector.load %arg2[%c0_1, %c0_2] : memref<32x128xf32, #tpu.memory_space<vmem>>, vector<32x128xf32>
    %3 = arith.truncf %2 : vector<32x128xf32> to vector<32x128xbf16>
    %cst = arith.constant dense<0.000000e+00> : vector<32x128xf32>
    %4 = tpu.matmul %1, %3, %cst {dimension_numbers = #tpu.dot_dimension_numbers<[1], [0], [0], [1], [0, 0, 1, 1], [], []>} : vector<32x32xbf16>, vector<32x128xbf16>, vector<32x128xf32> -> vector<32x128xf32>
    %c0_3 = arith.constant 0 : index
    %c0_4 = arith.constant 0 : index
    %5 = vector.load %arg3[%c0_3, %c0_4] : memref<32x128xf32, #tpu.memory_space<vmem>>, vector<32x128xf32>
    tpu.vector_store %arg3[%c0_3, %c0_4], %4 {strides = array<i32>} : memref<32x128xf32, #tpu.memory_space<vmem>>, vector<32x128xf32>,
    return
  }
  func.func @transform_0(%arg0: i32) -> (i32, i32) {
    %c0_i32 = arith.constant 0 : i32
    %c0_i32_0 = arith.constant 0 : i32
    return %arg0, %c0_i32 : i32, i32
  }
  func.func @transform_1(%arg0: i32) -> (i32, i32) {
    %c0_i32 = arith.constant 0 : i32
    %c0_i32_0 = arith.constant 0 : i32
    %c0_i32_1 = arith.constant 0 : i32
    return %c0_i32, %c0_i32_0 : i32, i32
  }
  func.func @transform_2(%arg0: i32) -> (i32, i32) {
    %c0_i32 = arith.constant 0 : i32
    %c0_i32_0 = arith.constant 0 : i32
    return %arg0, %c0_i32 : i32, i32
  }
}

</mosaic_0001>

<bundles_post_ra>
// kernel: tpu_custom_call.1
= control target key start
LH: loop header
LB: loop body
LE: loop exit
PB: predicated region body
PF: predicated region fallthrough
CT: control target
= control target key end

     0   :  { %7 = vsyncpa [#allocation3], 0  ;;  %s287_s0 = inlined_call_operand.hbm [shape: f32[32,32], index: 0, kind: input, shape index: {}]   ;;  %s288_s1 = inlined_call_operand.hbm [shape: f32[32,128], index: 1, kind: input, shape index: {}]   ;;  %s289_s2 = inlined_call_operand.hbm [shape: f32[32,128], index: 2, kind: output, shape index: {}]  }
   0x1   :  { %8 = vsyncpa [#allocation6], 0 }
   0x2   :  { %9 = vsyncpa [#allocation4], 0  ;;  %s222_s9 = smov [#allocation2]   ;;  %s150_s13 = scalar_lea.hbm %s287_s0, 512 }
   0x3   :  { %s15_s10 = sshll.u32 %s222_s9, 4  ;;  %p151_p0 = scmp.ne.s32.totalorder %s287_s0, %s150_s13  ;;  %s16_s10 = int_to_ptr.vmem [resolvable:$true] %s15_s10 }
   0x4   :  { %p154_p1 = scmp.lt.u32.totalorder %s150_s13, %s287_s0 }
   0x6   :  { %p156_p2 = pnand %p154_p1, %p151_p0 }
   0x8   :  { %159 = shalt.err (!%p156_p2)
}
   0x9   :  { %s160_s18 = scalar_lea.vmem %s16_s10, 512  ;;  %p165_p4 = scmp.lt.s32.totalorder %s16_s10, %s16_s10 }
   0xa   :  { %p161_p3 = scmp.ne.s32.totalorder %s16_s10, %s160_s18  ;;  %p166_p5 = scmp.lt.s32.totalorder %s160_s18, %s160_s18 }
   0xc   :  { %p167_p6 = por %p166_p5, %p165_p4 }
   0xe   :  { %p168_p7 = pnand %p167_p6, %p161_p3 }
  0x10   :  { %171 = shalt.err (!%p168_p7)
}
  0x11   :  { %s223_s19 = smov 128   ;;  %s224_s20 = smov 8  }
  0x12   :  { %21 = dma.hbm_to_vmem [thread:$0]  %s287_s0, 512, %s16_s10, [#allocation3], %s223_s19, %s223_s19, %s224_s20  }
  0x13   :  { %s225_s23 = smov [#allocation5]   ;;  %s172_s27 = scalar_lea.hbm %s288_s1, 512 }
  0x14   :  { %s27_s24 = sshll.u32 %s225_s23, 4  ;;  %p173_p8 = scmp.ne.s32.totalorder %s288_s1, %s172_s27  ;;  %s28_s24 = int_to_ptr.vmem [resolvable:$true] %s27_s24 }
  0x15   :  { %p176_p9 = scmp.lt.u32.totalorder %s172_s27, %s288_s1 }
  0x17   :  { %p178_p10 = pnand %p176_p9, %p173_p8 }
  0x19   :  { %181 = shalt.err (!%p178_p10)
}
  0x1a   :  { %s182_s4 = scalar_lea.vmem %s28_s24, 512  ;;  %p187_p12 = scmp.lt.s32.totalorder %s28_s24, %s28_s24 }
  0x1b   :  { %p183_p11 = scmp.ne.s32.totalorder %s28_s24, %s182_s4  ;;  %p188_p13 = scmp.lt.s32.totalorder %s182_s4, %s182_s4 }
  0x1d   :  { %p189_p0 = por %p188_p13, %p187_p12 }
  0x1f   :  { %p190_p1 = pnand %p189_p0, %p183_p11 }
  0x21   :  { %193 = shalt.err (!%p190_p1)
}
  0x22   :  { %33 = dma.hbm_to_vmem [thread:$0]  %s288_s1, 512, %s28_s24, [#allocation6], %s223_s19, %s223_s19, %s224_s20  }
  0x23   :  { %216 = dma.done.wait [#allocation3], 512  }
  0x24   :  { %217 = vsyncadd [#allocation3], 4294966784 }
  0x25   :  { %218 = dma.done.wait [#allocation6], 512  }
  0x26   :  { %219 = vsyncadd [#allocation6], 4294966784  ;;  %v47_v0 = vld [vmem:[#allocation5] sm:$0xff]  ;;  %v48_v1 = vld [vmem:[#allocation5 + $0x8] sm:$0xff]  ;;  %vm53_vm0 = vcmask 261120   ;;  %s226_s1 = smov [#allocation7]  }
  0x27   :  { %v49_v2 = vld [vmem:[#allocation5 + $0x10] sm:$0xff]  ;;  %v51_v3 = vpack.c.bf16 %v48_v1, %v47_v0  ;;  %v50_v4 = vld [vmem:[#allocation5 + $0x18] sm:$0xff]  ;;  %v41_v5 = vld [vmem:[#allocation2] sm:$0xff]  ;;  %s118_s6 = sshll.u32 %s226_s1, 4  ;;  %s119_s6 = int_to_ptr.vmem [resolvable:$true] %s118_s6 }
  0x28   :  { %v42_v6 = vld [vmem:[#allocation2 + $0x8] sm:$0xff]  ;;  %v52_v7 = vpack.c.bf16 %v50_v4, %v49_v2  ;;  %v43_v9 = vld [vmem:[#allocation2 + $0x10] sm:$0xff]  ;;  %v44_v10 = vld [vmem:[#allocation2 + $0x18] sm:$0xff]  ;;  %s194_s7 = scalar_lea.vmem %s119_s6, 512  ;;  %p199_p3 = scmp.lt.s32.totalorder %s119_s6, %s119_s6 }
  0x29   :  { %v45_v8 = vpack.c.bf16 %v42_v6, %v41_v5  ;;  %137 = vmatprep.subr.bf16.mxu0 %v51_v3  ;;  %v46_v11 = vpack.c.bf16 %v44_v10, %v43_v9  ;;  %p195_p2 = scmp.ne.s32.totalorder %s119_s6, %s194_s7  ;;  %p200_p4 = scmp.lt.s32.totalorder %s194_s7, %s194_s7 }
  0x2a   :  { %138 = vmatpush3.bf16.msra.mxu0 %v51_v3 }
  0x2b   :  { %141 = vmatprep.mubr.msk.bf16.mxu0 %vm53_vm0, %v45_v8  ;;  %139 = vmatprep.subr.bf16.mxu0 %v52_v7  ;;  %p201_p5 = por %p200_p4, %p199_p3 }
  0x2d   :  { %p202_p6 = pnand %p201_p5, %p195_p2 }
  0x2e   :  { %140 = vmatpush3.bf16.msra.mxu0 %v52_v7 }
  0x31   :  { %142 = vmatmul.mubr.msk.bf16.vlgmr.msra.gmra.mrb[0].mxu0 %vm53_vm0, %v46_v11 }
 0x104   :  { %v143_v12 = vpop.f32.mrb[0].mxu0 }
 0x105   :  { %111 = vst [vmem:[#allocation7 + $0x10] sm:$0xff] %v143_v12  ;;  %v94_v13 = vpop.f32.mrb[1].mxu0 }
 0x106   :  { %109 = vst [vmem:[#allocation7] sm:$0xff] %v94_v13  ;;  %v144_v14 = vpop.f32.mrb[2].mxu0 }
 0x107   :  { %112 = vst [vmem:[#allocation7 + $0x18] sm:$0xff] %v144_v14  ;;  %v97_v15 = vpop.f32.mrb[3].mxu0 }
 0x108   :  { %110 = vst [vmem:[#allocation7 + $0x8] sm:$0xff] %v97_v15 }
 0x109   :  { %205 = shalt.err (!%p202_p6)
}
 0x10a   :  { %s206_s10 = scalar_lea.hbm %s289_s2, 512 }
 0x10b   :  { %p207_p7 = scmp.ne.s32.totalorder %s289_s2, %s206_s10  ;;  %p210_p8 = scmp.lt.u32.totalorder %s206_s10, %s289_s2 }
 0x10d   :  { %p212_p9 = pnand %p210_p8, %p207_p7 }
 0x10f   :  { %215 = shalt.err (!%p212_p9)
}
 0x110   :  { %124 = dma.vmem_to_hbm [thread:$0]  %s119_s6, 512, %s289_s2, [#allocation4], %s223_s19, %s223_s19, %s224_s20  }
 0x111   :  { %220 = dma.done.wait [#allocation4], 512  }
 0x112   :  { %221 = vsyncadd [#allocation4], 4294966784 }
 0x113   :  { %128 = vsyncpa [#allocation3], 1 }
 0x114   :  { %129 = vsyncpa [#allocation6], 1 }
 0x115   :  { %130 = vsyncpa [#allocation4], 1 }

</bundles_post_ra>
